<compile_context>
chip_gen: v5e
topology: v5e:2x2
jax: 0.10.0
libtpu: 0.0.40
codegen_flags: <defaults>
</compile_context>

<pallas_src>
import functools

import jax
import jax.numpy as jnp
from jax.experimental import pallas as pl
from jax.experimental.pallas import tpu as pltpu


def _label_smoothing_loss_kernel(tgt_ref, x_ref, sim_ref, out_ref, *,
                                 smoothing, n_valid, tile_n):
    i = pl.program_id(0)

    @pl.when(i == 0)
    def _():
        out_ref[...] = jnp.zeros_like(out_ref)

    s = jnp.float32(smoothing)

    x = x_ref[...].astype(jnp.float32)      # (tile_n, C) logits
    sim = sim_ref[...].astype(jnp.float32)  # (tile_n, C) similarity
    tgt = tgt_ref[...]                      # (tile_n, 1) int32 class indices

    # Numerically stable row-wise log-partition (logsumexp).
    x_max = jnp.max(x, axis=1, keepdims=True)
    logz = x_max + jnp.log(jnp.sum(jnp.exp(x - x_max), axis=1, keepdims=True))

    # Fused soft target: t = s*sim + (1-s)*one_hot(target); never materialized in HBM.
    class_ids = jax.lax.broadcasted_iota(jnp.int32, x.shape, 1)
    t = s * sim + (1.0 - s) * (class_ids == tgt).astype(jnp.float32)

    # per_row = logZ * sum(t) - sum(t * x)   (two class-axis reductions instead of three)
    w = jnp.sum(t, axis=1, keepdims=True)                       # (tile_n, 1)
    t_dot_x = jnp.sum(t * x, axis=1, keepdims=True)             # (tile_n, 1)
    per_row = logz * w - t_dot_x                                # (tile_n, 1)

    # Mask rows of the ragged last block (global row index >= n_valid).
    row_ids = i * tile_n + jax.lax.broadcasted_iota(jnp.int32, (x.shape[0], 1), 0)
    per_row = jnp.where(row_ids < n_valid, per_row, 0.0)

    # Accumulate into the resident (1,1) output block; single writeback at grid end.
    out_ref[...] += jnp.sum(per_row)


def _vmem_capacity_bytes():
    try:
        return int(pltpu.get_tpu_info().vmem_capacity_bytes)
    except Exception:
        return 64 * 1024 * 1024  # v7x per-TC size; safe floor on v5e/v6e too


def _sublane_pack(itemsize):
    # Rows per packing granule: f32 -> 8, bf16/f16 -> 16, int8/fp8 -> 32.
    return 8 * max(1, 4 // max(1, itemsize))


def _choose_tile_n(n, c, x_item, s_item, sublane, vmem_cap):
    """Largest sublane-aligned batch tile whose pipeline buffers + f32 temps fit VMEM."""
    # Per-row bytes:
    #   pipeline: 2 buffers x (logits + similarity in native dtype + 4B target)
    #   in-kernel f32 temporaries: ~5 row-sized arrays (x, sim, exp, t, t*x)
    per_row = 2 * (c * (x_item + s_item) + 4) + 5 * c * 4
    budget = vmem_cap // 2
    max_rows = max(sublane, budget // max(per_row, 1))
    max_rows = (max_rows // sublane) * sublane
    tile = min(max_rows, 4096)
    # Don't exceed the batch itself (floor to sublane so non-final blocks stay in-bounds).
    n_floor = max(sublane, (n // sublane) * sublane)
    return max(sublane, min(tile, n_floor))


def label_smoothing_loss(logits, target, similarity, smoothing=0.5):
    """Pallas TPU implementation of LabelSmoothingLoss.forward (CrossEntropy, mean)."""
    n, c = logits.shape
    x_item = jnp.dtype(logits.dtype).itemsize
    s_item = jnp.dtype(similarity.dtype).itemsize

    vmem_cap = _vmem_capacity_bytes()
    sublane = _sublane_pack(min(x_item, s_item))
    tile_n = _choose_tile_n(n, c, x_item, s_item, sublane, vmem_cap)
    num_tiles = pl.cdiv(n, tile_n)

    tgt2d = target.astype(jnp.int32).reshape(n, 1)

    kernel = functools.partial(
        _label_smoothing_loss_kernel,
        smoothing=float(smoothing), n_valid=n, tile_n=tile_n)

    cost = pl.CostEstimate(
        flops=8 * n * c,
        transcendentals=n * c,
        bytes_accessed=n * c * (x_item + s_item) + 4 * n + 4,
    )

    total = pl.pallas_call(
        kernel,
        out_shape=jax.ShapeDtypeStruct((1, 1), jnp.float32),
        grid=(num_tiles,),
        in_specs=[
            pl.BlockSpec((tile_n, 1), lambda i: (i, 0)),   # target  (N, 1) int32
            pl.BlockSpec((tile_n, c), lambda i: (i, 0)),   # logits  (N, C), native dtype
            pl.BlockSpec((tile_n, c), lambda i: (i, 0)),   # similarity (N, C), native dtype
        ],
        # Block == full (1,1) array: resident accumulator, one HBM writeback at the end.
        out_specs=pl.BlockSpec((1, 1), lambda i: (0, 0)),
        compiler_params=pltpu.CompilerParams(
            dimension_semantics=("arbitrary",),            # reduction axis (accumulator)
            vmem_limit_bytes=int(vmem_cap * 3 // 4),
        ),
        cost_estimate=cost,
    )(tgt2d, logits, similarity)

    # PyTorch CrossEntropyLoss(reduction='mean') divides by the global batch size.
    return total[0, 0] / jnp.float32(n)


def _reference_loss(logits, target, similarity, smoothing=0.5):
    n, c = logits.shape
    one_hot = jax.nn.one_hot(target, c, dtype=jnp.float32)
    target_smooth = one_hot * (1.0 - smoothing) + smoothing * similarity.astype(jnp.float32)
    log_probs = jax.nn.log_softmax(logits.astype(jnp.float32), axis=1)
    return jnp.mean(-jnp.sum(target_smooth * log_probs, axis=1))


if __name__ == "__main__":
    key = jax.random.PRNGKey(0)
    k1, k2, k3, k4, k5, k6 = jax.random.split(key, 6)

    # Small shapes consistent with the module (batch of logits over C classes).
    N, C = 8, 16
    logits = jax.random.normal(k1, (N, C), dtype=jnp.float32)
    target = jax.random.randint(k2, (N,), 0, C, dtype=jnp.int32)
    similarity = jax.nn.softmax(jax.random.normal(k3, (N, C), dtype=jnp.float32), axis=1)

    loss = label_smoothing_loss(logits, target, similarity, smoothing=0.5)
    loss = jax.block_until_ready(loss)
    ref = _reference_loss(logits, target, similarity, smoothing=0.5)
    assert jnp.allclose(loss, ref, atol=1e-5, rtol=1e-5), (loss, ref)

    # Second check: batch not a multiple of the tile (exercises the ragged-block mask path).
    N2, C2 = 13, 40
    logits2 = jax.random.normal(k4, (N2, C2), dtype=jnp.float32)
    target2 = jax.random.randint(k5, (N2,), 0, C2, dtype=jnp.int32)
    similarity2 = jax.nn.softmax(jax.random.normal(k6, (N2, C2), dtype=jnp.float32), axis=1)

    loss2 = label_smoothing_loss(logits2, target2, similarity2, smoothing=0.3)
    loss2 = jax.block_until_ready(loss2)
    ref2 = _reference_loss(logits2, target2, similarity2, smoothing=0.3)
    assert jnp.allclose(loss2, ref2, atol=1e-5, rtol=1e-5), (loss2, ref2)

    print("KERNEL_OK")
</pallas_src>

<mosaic_0001>
module attributes {stable_mosaic.version = 11 : i64} {
  func.func @_label_smoothing_loss_kernel(%arg0: i32, %arg1: memref<8x1xi32, #tpu.memory_space<vmem>>, %arg2: memref<8x16xf32, #tpu.memory_space<vmem>>, %arg3: memref<8x16xf32, #tpu.memory_space<vmem>>, %arg4: memref<1x1xf32, #tpu.memory_space<vmem>>) attributes {dimension_semantics = [#tpu.dimension_semantics<arbitrary>], iteration_bounds = array<i64: 1>, scalar_prefetch = 0 : i64, scratch_operands = 0 : i64, tpu.core_type = #tpu.core_type<tc>, window_params = [{transform_indices = @transform_0, window_bounds = array<i64: 8, 1>}, {transform_indices = @transform_1, window_bounds = array<i64: 8, 16>}, {transform_indices = @transform_2, window_bounds = array<i64: 8, 16>}, {pipeline_mode = #tpu.pipeline_mode<synchronous>, transform_indices = @transform_3, window_bounds = array<i64: 1, 1>}]} {
    %c0_i32 = arith.constant 0 : i32
    %0 = arith.cmpi eq, %arg0, %c0_i32 : i32
    %1 = arith.extui %0 : i1 to i32
    %c0_i32_0 = arith.constant 0 : i32
    %2 = arith.cmpi ne, %1, %c0_i32_0 : i32
    scf.if %2 {
      %cst_19 = arith.constant 0.000000e+00 : f32
      %49 = vector.broadcast %cst_19 : f32 to vector<1x1xf32>
      %c0_20 = arith.constant 0 : index
      %c0_21 = arith.constant 0 : index
      %50 = vector.load %arg4[%c0_20, %c0_21] : memref<1x1xf32, #tpu.memory_space<vmem>>, vector<1x1xf32>
      tpu.vector_store %arg4[%c0_20, %c0_21], %49 {strides = array<i32>} : memref<1x1xf32, #tpu.memory_space<vmem>>, vector<1x1xf32>,
    } else {
    }
    %c0 = arith.constant 0 : index
    %c0_1 = arith.constant 0 : index
    %3 = vector.load %arg2[%c0, %c0_1] : memref<8x16xf32, #tpu.memory_space<vmem>>, vector<8x16xf32>
    %c0_2 = arith.constant 0 : index
    %c0_3 = arith.constant 0 : index
    %4 = vector.load %arg3[%c0_2, %c0_3] : memref<8x16xf32, #tpu.memory_space<vmem>>, vector<8x16xf32>
    %c0_4 = arith.constant 0 : index
    %c0_5 = arith.constant 0 : index
    %5 = vector.load %arg1[%c0_4, %c0_5] : memref<8x1xi32, #tpu.memory_space<vmem>>, vector<8x1xi32>
    %cst = arith.constant dense<0xFF800000> : vector<8xf32>
    %6 = vector.multi_reduction <maximumf>, %3, %cst [1] : vector<8x16xf32> to vector<8xf32>
    %7 = vector.shape_cast %6 : vector<8xf32> to vector<8x1xf32>
    %8 = vector.broadcast %7 : vector<8x1xf32> to vector<8x16xf32>
    %9 = arith.subf %3, %8 : vector<8x16xf32>
    %10 = math.exp %9 : vector<8x16xf32>
    %cst_6 = arith.constant dense<0.000000e+00> : vector<8xf32>
    %11 = vector.multi_reduction <add>, %10, %cst_6 [1] : vector<8x16xf32> to vector<8xf32>
    %12 = vector.shape_cast %11 : vector<8xf32> to vector<8x1xf32>
    %13 = math.log %12 : vector<8x1xf32>
    %14 = arith.addf %7, %13 : vector<8x1xf32>
    %15 = tpu.iota {dimensions = array<i32: 1>} : vector<8x16xi32>
    %cst_7 = arith.constant 5.000000e-01 : f32
    %16 = vector.broadcast %cst_7 : f32 to vector<8x16xf32>
    %17 = arith.mulf %16, %4 : vector<8x16xf32>
    %cst_8 = arith.constant 1.000000e+00 : f32
    %cst_9 = arith.constant 5.000000e-01 : f32
    %18 = arith.subf %cst_8, %cst_9 : f32
    %19 = vector.broadcast %5 : vector<8x1xi32> to vector<8x16xi32>
    %20 = arith.cmpi eq, %15, %19 : vector<8x16xi32>
    %21 = arith.extui %20 : vector<8x16xi1> to vector<8x16xi32>
    %22 = arith.sitofp %21 : vector<8x16xi32> to vector<8x16xf32>
    %23 = vector.broadcast %18 : f32 to vector<8x16xf32>
    %24 = arith.mulf %23, %22 : vector<8x16xf32>
    %25 = arith.addf %17, %24 : vector<8x16xf32>
    %cst_10 = arith.constant dense<0.000000e+00> : vector<8xf32>
    %26 = vector.multi_reduction <add>, %25, %cst_10 [1] : vector<8x16xf32> to vector<8xf32>
    %27 = vector.shape_cast %26 : vector<8xf32> to vector<8x1xf32>
    %28 = arith.mulf %25, %3 : vector<8x16xf32>
    %cst_11 = arith.constant dense<0.000000e+00> : vector<8xf32>
    %29 = vector.multi_reduction <add>, %28, %cst_11 [1] : vector<8x16xf32> to vector<8xf32>
    %30 = vector.shape_cast %29 : vector<8xf32> to vector<8x1xf32>
    %31 = arith.mulf %14, %27 : vector<8x1xf32>
    %32 = arith.subf %31, %30 : vector<8x1xf32>
    %c8_i32 = arith.constant 8 : i32
    %33 = arith.muli %arg0, %c8_i32 : i32
    %34 = tpu.iota {dimensions = array<i32: 0>} : vector<8x1xi32>
    %35 = vector.broadcast %33 : i32 to vector<8x1xi32>
    %36 = arith.addi %35, %34 : vector<8x1xi32>
    %c8_i32_12 = arith.constant 8 : i32
    %37 = vector.broadcast %c8_i32_12 : i32 to vector<8x1xi32>
    %38 = arith.cmpi slt, %36, %37 : vector<8x1xi32>
    %cst_13 = arith.constant 0.000000e+00 : f32
    %39 = vector.broadcast %cst_13 : f32 to vector<8x1xf32>
    %40 = arith.select %38, %32, %39 : vector<8x1xi1>, vector<8x1xf32>
    %c0_14 = arith.constant 0 : index
    %c0_15 = arith.constant 0 : index
    %41 = vector.load %arg4[%c0_14, %c0_15] : memref<1x1xf32, #tpu.memory_space<vmem>>, vector<1x1xf32>
    %42 = vector.shape_cast %40 : vector<8x1xf32> to vector<1x8x1xf32>
    %cst_16 = arith.constant dense<0.000000e+00> : vector<1xf32>
    %43 = vector.multi_reduction <add>, %42, %cst_16 [1, 2] : vector<1x8x1xf32> to vector<1xf32>
    %44 = vector.shape_cast %43 : vector<1xf32> to vector<1x1x1xf32>
    %45 = vector.extract %44[0, 0, 0] : f32 from vector<1x1x1xf32>
    %46 = vector.broadcast %45 : f32 to vector<1x1xf32>
    %47 = arith.addf %41, %46 : vector<1x1xf32>
    %c0_17 = arith.constant 0 : index
    %c0_18 = arith.constant 0 : index
    %48 = vector.load %arg4[%c0_17, %c0_18] : memref<1x1xf32, #tpu.memory_space<vmem>>, vector<1x1xf32>
    tpu.vector_store %arg4[%c0_17, %c0_18], %47 {strides = array<i32>} : memref<1x1xf32, #tpu.memory_space<vmem>>, vector<1x1xf32>,
    return
  }
  func.func @transform_0(%arg0: i32) -> (i32, i32) {
    %c0_i32 = arith.constant 0 : i32
    %c0_i32_0 = arith.constant 0 : i32
    return %arg0, %c0_i32 : i32, i32
  }
  func.func @transform_1(%arg0: i32) -> (i32, i32) {
    %c0_i32 = arith.constant 0 : i32
    %c0_i32_0 = arith.constant 0 : i32
    return %arg0, %c0_i32 : i32, i32
  }
  func.func @transform_2(%arg0: i32) -> (i32, i32) {
    %c0_i32 = arith.constant 0 : i32
    %c0_i32_0 = arith.constant 0 : i32
    return %arg0, %c0_i32 : i32, i32
  }
  func.func @transform_3(%arg0: i32) -> (i32, i32) {
    %c0_i32 = arith.constant 0 : i32
    %c0_i32_0 = arith.constant 0 : i32
    %c0_i32_1 = arith.constant 0 : i32
    return %c0_i32, %c0_i32_0 : i32, i32
  }
}

</mosaic_0001>

<bundles_post_ra>
// kernel: tpu_custom_call.1
= control target key start
LH: loop header
LB: loop body
LE: loop exit
PB: predicated region body
PF: predicated region fallthrough
CT: control target
= control target key end

     0   :  { %8 = vsyncpa [#allocation3], 0  ;;  %s217_s0 = inlined_call_operand.vmem [shape: s32[8,1], index: 0, kind: input, shape index: {}]   ;;  %s218_s1 = inlined_call_operand.vmem [shape: f32[8,16], index: 1, kind: input, shape index: {}]   ;;  %s219_s2 = inlined_call_operand.hbm [shape: f32[8,16], index: 2, kind: input, shape index: {}]   ;;  %s220_s3 = inlined_call_operand.hbm [shape: f32[1,1], index: 3, kind: output, shape index: {}]  }
   0x1   :  { %9 = vsyncpa [#allocation4], 0  ;;  %s19_s14 = sshll.u32 %s219_s2, 4  ;;  %s175_s15 = smov [#allocation2]   ;;  %s20_s14 = int_to_ptr.hbm [resolvable:$true] %s19_s14 }
   0x2   :  { %s21_s16 = sshll.u32 %s175_s15, 4  ;;  %s22_s16 = int_to_ptr.vmem [resolvable:$true] %s21_s16 }
   0x3   :  { %24 = dma.hbm_to_vmem [thread:$0]  %s20_s14, 128, %s22_s16, [#allocation3]  }
   0x4   :  { %171 = dma.done.wait [#allocation3], 128  }
   0x5   :  { %172 = vsyncadd [#allocation3], 4294967168  ;;  %v176_v0 = vmov 0   ;;  %vm38_vm0 = vcmask 130048   ;;  %v35_v1 = vld [vmem:[%s218_s1] sm:$0xff]  ;;  %vm33_vm1 = vcmask 0   ;;  %v51_v10 = vlaneseq }
   0x6   :  { %118 = vset.pattern.permute.xlu0 %v176_v0  ;;  %v39_v2 = vsel %vm38_vm0, %v35_v1, -inf  ;;  %v37_v3 = vld [vmem:[%s217_s0] sm:$0xff]  ;;  %v177_v4 = vmov 0.0   ;;  %vm79_vm3 = vcmask 7168   ;;  %s178_s0 = smov [#allocation5]   ;;  %s101_s22 = sshll.u32 %s220_s3, 4  ;;  %s102_s22 = int_to_ptr.hbm [resolvable:$true] %s101_s22 }
   0x7   :  { %40 = vmax.xlane.f32.xlu0 %v39_v2  ;;  %34 = vst.msk [vmem:[#allocation5] sm:$0x1] %vm33_vm1, %v177_v4  ;;  %v52_v11 = vand.u32 127, %v51_v10  ;;  %v36_v12 = vld [vmem:[#allocation2] sm:$0xff]  ;;  %s99_s1 = sshll.u32 %s178_s0, 4  ;;  %s100_s1 = int_to_ptr.vmem [resolvable:$true] %s99_s1 }
   0x8   :  { %v53_v14 = vmul.f32 0.5, %v36_v12 }
   0xe   :  { %v78_v37 = vld [vmem:[#allocation5] sm:$0x1] }
  0x1b   :  { %55 = vperm.xlu0 %118, %v37_v3  }
  0x7a   :  { %v41_v5 = vpop.xlane.xlu0 %40 }
  0x7b   :  { %v42_v6 = vsub.f32 %v35_v1, %v41_v5 }
  0x7d   :  { %v43_v7 = vmul.f32 1.442695, %v42_v6 }
  0x7f   :  { %119 = vpow2.f32 %v43_v7 }
  0x85   :  { %v120_v8 = vpop.eup %119 }
  0x86   :  { %v45_v9 = vsel %vm38_vm0, %v120_v8, 0.0 }
  0x87   :  { %46 = vadd.xlane.f32.xlu1 %v45_v9 }
  0x8d   :  { %v56_v13 = vpop.permute.xlu0 %55 }
  0x8e   :  { %vm57_vm2 = vcmp.eq.s32.totalorder %v52_v11, %v56_v13 }
  0x8f   :  { %v111_v15 = vsel %vm57_vm2, 1.0, %v177_v4 }
  0x90   :  { %v60_v16 = vmul.f32 0.5, %v111_v15 }
  0x92   :  { %v61_v17 = vadd.f32 %v60_v16, %v53_v14 }
  0x94   :  { %v62_v18 = vsel %vm38_vm0, %v61_v17, 0.0  ;;  %v65_v19 = vmul.f32 %v61_v17, %v35_v1 }
  0x95   :  { %63 = vadd.xlane.f32.xlu1 %v62_v18 }
  0x96   :  { %v66_v20 = vsel %vm38_vm0, %v65_v19, 0.0 }
  0x97   :  { %67 = vadd.xlane.f32.xlu2 %v66_v20 }
  0xfa   :  { %v47_v21 = vpop.xlane.xlu1 %46 }
  0xfb   :  { %121 = vlog2.f32 %v47_v21 }
 0x101   :  { %v122_v22 = vpop.eup %121 }
 0x102   :  { %v49_v23 = vmul.f32 0.6931472, %v122_v22 }
 0x104   :  { %v50_v24 = vadd.f32 %v49_v23, %v41_v5 }
 0x108   :  { %v64_v25 = vpop.xlane.xlu1 %63 }
 0x109   :  { %v69_v26 = vmul.f32 %v64_v25, %v50_v24 }
 0x10a   :  { %v68_v27 = vpop.xlane.xlu2 %67 }
 0x10b   :  { %v70_v28 = vsub.f32 %v69_v26, %v68_v27 }
 0x10d   :  { %v80_v29 = vsel %vm79_vm3, %v70_v28, 0.0 }
 0x10e   :  { %81 = vadd.xlane.f32.xlu2 %v80_v29 }
 0x181   :  { %v82_v30 = vpop.xlane.xlu2 %81 }
 0x182   :  { %v83_v31 = vrot.slane %v82_v30, 4 }
 0x184   :  { %v84_v32 = vadd.f32 %v83_v31, %v82_v30 }
 0x186   :  { %v85_v33 = vrot.slane %v84_v32, 2 }
 0x188   :  { %v86_v34 = vadd.f32 %v85_v33, %v84_v32 }
 0x18a   :  { %v87_v35 = vrot.slane %v86_v34, 1 }
 0x18c   :  { %v88_v36 = vadd.f32 %v87_v35, %v86_v34 }
 0x18e   :  { %112 = vpush %v88_v36 }
 0x1bf   :  { %s113_s23 = spop %112 }
 0x1c0   :  { %v90_v38 = vstv %s113_s23 }
 0x1c1   :  { %v91_v39 = vadd.f32 %v90_v38, %v78_v37 }
 0x1c3   :  { %93 = vst.msk [vmem:[#allocation5] sm:$0x1] %vm33_vm1, %v91_v39 }
 0x1c4   :  { %104 = dma.vmem_to_hbm [thread:$0]  %s100_s1, 16, %s102_s22, [#allocation4]  }
 0x1c5   :  { %173 = dma.done.wait [#allocation4], 16  }
 0x1c6   :  { %174 = vsyncadd [#allocation4], 4294967280 }
 0x1c7   :  { %109 = vsyncpa [#allocation3], 1 }
 0x1c8   :  { %110 = vsyncpa [#allocation4], 1 }

</bundles_post_ra>
